<compile_context>
chip_gen: v7x
topology: tpu7x:2x2x1
jax: 0.10.0
libtpu: 0.0.40
codegen_flags: <defaults>
</compile_context>

<pallas_src>
import math
import jax
import jax.numpy as jnp
from jax import lax
from jax.experimental import pallas as pl
from jax.experimental.pallas import tpu as pltpu

SQRT2 = float(math.sqrt(2.0))


# ----------------------------------------------------------------------------- kernels

def style_mlp(z, w_stack, b_stack):
    """PixelNorm followed by n_mlp EqualLinear(+fused leaky relu) layers.

    z: (B, S), w_stack: (L, S, S) effective weights (out = x @ w), b_stack: (L, S).
    """
    B, S = z.shape
    L = w_stack.shape[0]

    def kernel(z_ref, w_ref, b_ref, o_ref):
        x = z_ref[...]
        # PixelNorm: x * rsqrt(mean(x^2, dim=1) + 1e-8)
        x = x * lax.rsqrt(jnp.mean(x * x, axis=1, keepdims=True) + 1e-8)
        for l in range(L):  # static unroll (L is small)
            x = jnp.dot(x, w_ref[l], preferred_element_type=jnp.float32)
            x = x + b_ref[l:l + 1, :]
            # fused_leaky_relu: leaky_relu(x + b, 0.2) * sqrt(2)
            x = jnp.where(x >= 0.0, x, 0.2 * x) * SQRT2
        o_ref[...] = x

    return pl.pallas_call(
        kernel,
        out_shape=jax.ShapeDtypeStruct((B, S), jnp.float32),
        grid=(1,),
        in_specs=[pl.BlockSpec((B, S), lambda i: (0, 0)),
                  pl.BlockSpec((L, S, S), lambda i: (0, 0, 0)),
                  pl.BlockSpec((L, S), lambda i: (0, 0))],
        out_specs=pl.BlockSpec((B, S), lambda i: (0, 0)),
    )(z, w_stack, b_stack)


def fused_cips_chain(coords_bp2, emb_bpc, lff_w, lff_b,
                     weights, s_stack, d_stack, b_stack, layout, *, tp):
    """Fused LFF + conv1 + StyledConv chain + ToRGB skip accumulation.

    coords_bp2: (B, P, 2)          per-pixel (x, y) coordinates
    emb_bpc:    (B, P, Hd)         bilinearly-sampled ConstantInput
    lff_w:      (2, Hd), lff_b: (1, Hd)
    weights:    list of n_layers arrays (cin_l, cout_l), K-major, pre-scaled 1/sqrt(cin)
    s_stack:    (B, L, Cmax_in)    per-layer modulation (zero-padded in channel)
    d_stack:    (B, L, Cmax_out)   per-layer demodulation (ones where unused)
    b_stack:    (L, Cmax_out)      per-layer bias (zero-padded)
    layout:     list of (kind, cin, cout, has_demod) with kind in {'conv', 'rgb'}
    Returns rgb (B, P, 3).
    """
    B, P, _ = coords_bp2.shape
    Hd = lff_w.shape[1]
    n_layers = len(weights)
    cmax_in = s_stack.shape[2]
    cmax_out = d_stack.shape[2]
    assert P % tp == 0 and tp % 8 == 0, (P, tp)
    n_tiles = P // tp

    in_specs = [
        pl.BlockSpec((1, tp, 2), lambda b, t: (b, t, 0)),            # coords tile
        pl.BlockSpec((1, tp, Hd), lambda b, t: (b, t, 0)),           # sampled emb tile
        pl.BlockSpec((2, Hd), lambda b, t: (0, 0)),                  # LFF weight (resident)
        pl.BlockSpec((1, Hd), lambda b, t: (0, 0)),                  # LFF bias   (resident)
        pl.BlockSpec((1, n_layers, cmax_in), lambda b, t: (b, 0, 0)),    # all mod s
        pl.BlockSpec((1, n_layers, cmax_out), lambda b, t: (b, 0, 0)),   # all demod d
        pl.BlockSpec((n_layers, cmax_out), lambda b, t: (0, 0)),         # all biases
    ]
    for w in weights:
        cin, cout = w.shape
        in_specs.append(pl.BlockSpec((cin, cout), lambda b, t: (0, 0)))  # resident weight
    args = [coords_bp2, emb_bpc, lff_w, lff_b, s_stack, d_stack, b_stack] + list(weights)

    def kernel(*refs):
        c_ref, e_ref, lw_ref, lb_ref, s_ref, d_ref, b_ref = refs[:7]
        w_refs = refs[7:7 + n_layers]
        o_ref = refs[7 + n_layers]

        def finish(out, l, cout, kind, has_d):
            if has_d:
                out = out * d_ref[0, l:l + 1, 0:cout]       # demod folded into output
            out = out + b_ref[l:l + 1, 0:cout]
            if kind == "conv":
                out = jnp.where(out >= 0.0, out, 0.2 * out) * SQRT2   # FusedLeakyReLU
            return out

        # LFF: sin(1x1 conv of (x, y))
        cx = c_ref[0, :, 0:1]                               # (tp, 1)
        cy = c_ref[0, :, 1:2]
        x_lff = jnp.sin(cx * lw_ref[0:1, :] + cy * lw_ref[1:2, :] + lb_ref[...])
        emb = e_ref[0]                                      # (tp, Hd)

        # conv1 consumes concat([x_lff, emb], channel) via two matmuls on weight halves
        kind, cin, cout, has_d = layout[0]
        w0 = w_refs[0]
        s0 = s_ref[0, 0:1, 0:cin]                           # (1, 2*Hd)
        acc = jnp.dot(x_lff * s0[:, 0:Hd], w0[0:Hd, :],
                      preferred_element_type=jnp.float32)
        acc = acc + jnp.dot(emb * s0[:, Hd:2 * Hd], w0[Hd:2 * Hd, :],
                            preferred_element_type=jnp.float32)
        x = finish(acc, 0, cout, kind, has_d)

        rgb = jnp.zeros((tp, 3), jnp.float32)               # skip accumulator stays on-chip
        for l in range(1, n_layers):
            kind, cin, cout, has_d = layout[l]
            out = jnp.dot(x * s_ref[0, l:l + 1, 0:cin], w_refs[l][...],
                          preferred_element_type=jnp.float32)
            out = finish(out, l, cout, kind, has_d)
            if kind == "conv":
                x = out
            else:                                           # ToRGB: accumulate into skip
                rgb = rgb + out
        o_ref[0] = rgb

    return pl.pallas_call(
        kernel,
        out_shape=jax.ShapeDtypeStruct((B, P, 3), jnp.float32),
        grid=(B, n_tiles),
        in_specs=in_specs,
        out_specs=pl.BlockSpec((1, tp, 3), lambda b, t: (b, t, 0)),
        compiler_params=pltpu.CompilerParams(
            dimension_semantics=("parallel", "parallel"),
            vmem_limit_bytes=48 * 1024 * 1024),             # headroom for resident weights
    )(*args)


# ----------------------------------------------------------------------------- glue

def grid_sample_border_bilinear(emb_chw, coords):
    """F.grid_sample(mode='bilinear', padding_mode='border', align_corners=False)
    as a 4-tap gather (O(4P) instead of a dense O(P*S^2) interpolation matrix).
    emb_chw: (C, S, S); coords: (B, 2, H, W) with channel 0 = x, channel 1 = y.
    Returns (B, H*W, C)."""
    # TODO(synk): the data-dependent gather runs in XLA glue (jnp.take); an in-kernel
    # DMA-gather variant would be needed only if this stage ever became the bottleneck.
    C, S, _ = emb_chw.shape
    B = coords.shape[0]
    gx = coords[:, 0].reshape(B, -1)
    gy = coords[:, 1].reshape(B, -1)
    ix = jnp.clip(((gx + 1.0) * S - 1.0) * 0.5, 0.0, S - 1.0)   # border padding == clamp
    iy = jnp.clip(((gy + 1.0) * S - 1.0) * 0.5, 0.0, S - 1.0)
    x0 = jnp.floor(ix)
    y0 = jnp.floor(iy)
    wx1 = ix - x0
    wy1 = iy - y0
    wx0 = 1.0 - wx1
    wy0 = 1.0 - wy1
    x0i = x0.astype(jnp.int32)
    y0i = y0.astype(jnp.int32)
    x1i = jnp.minimum(x0i + 1, S - 1)
    y1i = jnp.minimum(y0i + 1, S - 1)
    emb_flat = emb_chw.reshape(C, S * S).T                       # (S*S, C)

    def tap(yi, xi, wt):
        return jnp.take(emb_flat, yi * S + xi, axis=0) * wt[..., None]

    return (tap(y0i, x0i, wy0 * wx0) + tap(y0i, x1i, wy0 * wx1)
            + tap(y1i, x0i, wy1 * wx0) + tap(y1i, x1i, wy1 * wx1))


def init_params(key, *, size, hidden_size, style_dim, n_mlp, base_channel, channel_multiplier):
    log_size = int(math.log(size, 2))
    n_intermediate = log_size - 1
    cm = channel_multiplier
    C = base_channel
    channels = {0: C, 1: C, 2: C, 3: C,
                4: max(C // 2, 1) * cm, 5: max(C // 4, 1) * cm,
                6: max(C // 8, 1) * cm, 7: max(C // 16, 1) * cm, 8: max(C // 32, 1) * cm}

    keys = iter(jax.random.split(key, 256))

    def randn(shape):
        return jax.random.normal(next(keys), shape, dtype=jnp.float32)

    def uniform(shape, a):
        return jax.random.uniform(next(keys), shape, dtype=jnp.float32, minval=-a, maxval=a)

    params = {}
    # LFF: ConLinear(2, hidden, is_first=True): weight ~ U(+-sqrt(9/2)), default conv bias
    params["lff_w"] = uniform((2, hidden_size), math.sqrt(9.0 / 2.0))       # stored (in, out)
    params["lff_b"] = uniform((1, hidden_size), 1.0 / math.sqrt(2.0))
    # ConstantInput: (1, hidden, size, size) -> stored (hidden, size, size)
    params["emb_input"] = randn((hidden_size, size, size))
    # Style MLP: EqualLinear(lr_mul); effective weight = randn/sqrt(in) regardless of lr_mul
    params["style_w"] = randn((n_mlp, style_dim, style_dim)) * (1.0 / math.sqrt(style_dim))
    params["style_b"] = jnp.zeros((n_mlp, style_dim), jnp.float32)

    def styled_conv_params(cin, cout):
        return dict(
            w=randn((cin, cout)) * (1.0 / math.sqrt(cin)),                  # K-major, pre-scaled 1/sqrt(cin*k*k)
            mod_w=randn((style_dim, cin)) * (1.0 / math.sqrt(style_dim)),   # EqualLinear effective weight
            mod_b=jnp.ones((cin,), jnp.float32),                            # bias_init=1
            act_b=jnp.zeros((1, cout), jnp.float32),                        # FusedLeakyReLU bias
        )

    def torgb_params(cin):
        return dict(
            w=randn((cin, 3)) * (1.0 / math.sqrt(cin)),
            mod_w=randn((style_dim, cin)) * (1.0 / math.sqrt(style_dim)),
            mod_b=jnp.ones((cin,), jnp.float32),
            bias=jnp.zeros((1, 3), jnp.float32),
        )

    in_ch = channels[0]
    params["conv1"] = styled_conv_params(2 * hidden_size, in_ch)
    linears, to_rgbs = [], []
    for i in range(n_intermediate):
        out_ch = channels[i]
        linears.append(styled_conv_params(in_ch, out_ch))
        linears.append(styled_conv_params(out_ch, out_ch))
        to_rgbs.append(torgb_params(out_ch))
        in_ch = out_ch
    params["linears"] = linears
    params["to_rgbs"] = to_rgbs
    params["n_intermediate"] = n_intermediate
    return params


def cips_skip_forward(params, coords, latent, *, size, hidden_size, tp=None):
    """coords: (B, 2, H, W) NCHW; latent: list with latent[0] of shape (B, style_dim).
    Returns (rgb (B, 3, H, W), None) like the PyTorch forward with default flags
    (truncation=1, input_is_latent=False, return_latents=False, eval-mode emb branch)."""
    z = latent[0]
    B, _, Hh, Ww = coords.shape
    P = Hh * Ww
    if tp is None:
        # largest pixel tile <= 2048 dividing P (sized so big configs still fit VMEM; f32)
        tp = P
        for cand in (2048, 1024, 512, 256, 128, 64, 32, 16, 8):
            if P % cand == 0:
                tp = cand
                break

    # 1. style mapping network (Pallas)
    w_lat = style_mlp(z, params["style_w"], params["style_b"])              # (B, style_dim)

    # 2. per-layer modulation (B, Cin) / demodulation (B, Cout) / bias, packed into
    #    three stacked channel-padded operands so the fused kernel takes ~3x fewer
    #    operands (one DMA descriptor each, not ~3 per layer).  Tiny matmuls in glue,
    #    so the conv weights stay batch-invariant and VMEM-resident inside the kernel.
    layer_params = [("conv", params["conv1"], True)]
    for i in range(params["n_intermediate"]):
        layer_params.append(("conv", params["linears"][2 * i], True))
        layer_params.append(("conv", params["linears"][2 * i + 1], True))
        layer_params.append(("rgb", params["to_rgbs"][i], False))

    cmax_in = max(p["w"].shape[0] for _, p, _ in layer_params)
    cmax_out = max(p["w"].shape[1] for _, p, _ in layer_params)
    weights, layout, s_rows, d_rows, b_rows = [], [], [], [], []
    for kind, p, demod in layer_params:
        cin, cout = p["w"].shape
        s = w_lat @ p["mod_w"] + p["mod_b"][None, :]                        # (B, Cin)
        if demod:
            d = lax.rsqrt((s * s) @ (p["w"] * p["w"]) + 1e-8)               # (B, Cout)
        else:
            d = jnp.ones((B, cout), jnp.float32)                            # unused (no demod)
        bias = p["act_b"] if "act_b" in p else p["bias"]                    # (1, Cout)
        s_rows.append(jnp.pad(s, ((0, 0), (0, cmax_in - cin))))
        d_rows.append(jnp.pad(d, ((0, 0), (0, cmax_out - cout))))
        b_rows.append(jnp.pad(bias, ((0, 0), (0, cmax_out - cout))))
        weights.append(p["w"])
        layout.append((kind, cin, cout, demod))
    s_stack = jnp.stack(s_rows, axis=1)                                     # (B, L, cmax_in)
    d_stack = jnp.stack(d_rows, axis=1)                                     # (B, L, cmax_out)
    b_stack = jnp.concatenate(b_rows, axis=0)                               # (L, cmax_out)

    # 3. ConstantInput sampled with bilinear grid_sample (eval branch), 4-tap gather
    emb = grid_sample_border_bilinear(params["emb_input"], coords)          # (B, P, hidden)

    # 4. fused LFF + conv chain + ToRGB skip (single Pallas kernel, P-tiled)
    coords_bp2 = jnp.transpose(coords, (0, 2, 3, 1)).reshape(B, P, 2)
    rgb = fused_cips_chain(coords_bp2, emb, params["lff_w"], params["lff_b"],
                           weights, s_stack, d_stack, b_stack, layout, tp=tp)  # (B, P, 3)

    rgb_nchw = jnp.transpose(rgb.reshape(B, Hh, Ww, 3), (0, 3, 1, 2))
    return rgb_nchw, None


# ----------------------------------------------------------------------------- main

if __name__ == "__main__":
    # Small but structurally faithful config: size=16 -> log_size=4 -> 3 (linear,linear,to_rgb)
    # stages; channels scaled down from 512 to 64 to keep the example small.
    size = 16
    hidden_size = 32
    style_dim = 32
    n_mlp = 4
    base_channel = 64
    B, H, W = 2, 16, 16

    key = jax.random.PRNGKey(0)
    k_param, k_lat = jax.random.split(key)
    params = init_params(k_param, size=size, hidden_size=hidden_size, style_dim=style_dim,
                         n_mlp=n_mlp, base_channel=base_channel, channel_multiplier=2)

    # coordinate grid in [-1, 1], NCHW (channel 0 = x, channel 1 = y), like convert_to_coord_format
    ys = jnp.linspace(-1.0, 1.0, H)
    xs = jnp.linspace(-1.0, 1.0, W)
    gy, gx = jnp.meshgrid(ys, xs, indexing="ij")
    coords = jnp.broadcast_to(jnp.stack([gx, gy], axis=0), (B, 2, H, W)).astype(jnp.float32)
    latent = [jax.random.normal(k_lat, (B, style_dim), dtype=jnp.float32)]

    # tp=128 exercises the multi-tile pixel grid (grid = (B, P // tp) = (2, 2)) with a
    # lane-wide (128) pixel tile at this demo size.
    rgb, _ = cips_skip_forward(params, coords, latent, size=size, hidden_size=hidden_size, tp=128)
    rgb = jax.block_until_ready(rgb)

    assert rgb.shape == (B, 3, H, W), rgb.shape
    assert bool(jnp.all(jnp.isfinite(rgb)))
    print("KERNEL_OK")
</pallas_src>

<mosaic_0001>
module attributes {stable_mosaic.version = 11 : i64} {
  func.func @kernel(%arg0: i32, %arg1: memref<2x32xf32, #tpu.memory_space<vmem>>, %arg2: memref<4x32x32xf32, #tpu.memory_space<vmem>>, %arg3: memref<4x32xf32, #tpu.memory_space<vmem>>, %arg4: memref<2x32xf32, #tpu.memory_space<vmem>>) attributes {dimension_semantics = [#tpu.dimension_semantics<arbitrary>], iteration_bounds = array<i64: 1>, scalar_prefetch = 0 : i64, scratch_operands = 0 : i64, tpu.core_type = #tpu.core_type<tc>, window_params = [{pipeline_mode = #tpu.pipeline_mode<synchronous>, transform_indices = @transform_0, window_bounds = array<i64: 2, 32>}, {pipeline_mode = #tpu.pipeline_mode<synchronous>, transform_indices = @transform_1, window_bounds = array<i64: 4, 32, 32>}, {pipeline_mode = #tpu.pipeline_mode<synchronous>, transform_indices = @transform_2, window_bounds = array<i64: 4, 32>}, {pipeline_mode = #tpu.pipeline_mode<synchronous>, transform_indices = @transform_3, window_bounds = array<i64: 2, 32>}]} {
    %c0 = arith.constant 0 : index
    %c0_0 = arith.constant 0 : index
    %0 = vector.load %arg1[%c0, %c0_0] : memref<2x32xf32, #tpu.memory_space<vmem>>, vector<2x32xf32>
    %1 = arith.mulf %0, %0 : vector<2x32xf32>
    %cst = arith.constant dense<0.000000e+00> : vector<2xf32>
    %2 = vector.multi_reduction <add>, %1, %cst [1] : vector<2x32xf32> to vector<2xf32>
    %3 = vector.shape_cast %2 : vector<2xf32> to vector<2x1xf32>
    %cst_1 = arith.constant 3.200000e+01 : f32
    %4 = vector.broadcast %cst_1 : f32 to vector<2x1xf32>
    %5 = arith.divf %3, %4 : vector<2x1xf32>
    %cst_2 = arith.constant 9.99999993E-9 : f32
    %6 = vector.broadcast %cst_2 : f32 to vector<2x1xf32>
    %7 = arith.addf %5, %6 : vector<2x1xf32>
    %8 = math.rsqrt %7 : vector<2x1xf32>
    %9 = vector.broadcast %8 : vector<2x1xf32> to vector<2x32xf32>
    %10 = arith.mulf %0, %9 : vector<2x32xf32>
    %c0_3 = arith.constant 0 : index
    %c0_4 = arith.constant 0 : index
    %c0_5 = arith.constant 0 : index
    %11 = vector.load %arg2[%c0_3, %c0_4, %c0_5] : memref<4x32x32xf32, #tpu.memory_space<vmem>>, vector<1x32x32xf32>
    %12 = vector.shape_cast %11 : vector<1x32x32xf32> to vector<32x32xf32>
    %cst_6 = arith.constant dense<0.000000e+00> : vector<2x32xf32>
    %13 = tpu.matmul %10, %12, %cst_6 {dimension_numbers = #tpu.dot_dimension_numbers<[1], [0], [0], [1], [0, 0, 1, 1], [], []>} : vector<2x32xf32>, vector<32x32xf32>, vector<2x32xf32> -> vector<2x32xf32>
    %c0_7 = arith.constant 0 : index
    %c0_8 = arith.constant 0 : index
    %14 = vector.load %arg3[%c0_7, %c0_8] : memref<4x32xf32, #tpu.memory_space<vmem>>, vector<1x32xf32>
    %15 = vector.broadcast %14 : vector<1x32xf32> to vector<2x32xf32>
    %16 = arith.addf %13, %15 : vector<2x32xf32>
    %cst_9 = arith.constant 0.000000e+00 : f32
    %17 = vector.broadcast %cst_9 : f32 to vector<2x32xf32>
    %18 = arith.cmpf oge, %16, %17 : vector<2x32xf32>
    %cst_10 = arith.constant 2.000000e-01 : f32
    %19 = vector.broadcast %cst_10 : f32 to vector<2x32xf32>
    %20 = arith.mulf %19, %16 : vector<2x32xf32>
    %21 = arith.select %18, %16, %20 : vector<2x32xi1>, vector<2x32xf32>
    %cst_11 = arith.constant 1.41421354 : f32
    %22 = vector.broadcast %cst_11 : f32 to vector<2x32xf32>
    %23 = arith.mulf %21, %22 : vector<2x32xf32>
    %c1 = arith.constant 1 : index
    %c0_12 = arith.constant 0 : index
    %c0_13 = arith.constant 0 : index
    %24 = vector.load %arg2[%c1, %c0_12, %c0_13] : memref<4x32x32xf32, #tpu.memory_space<vmem>>, vector<1x32x32xf32>
    %25 = vector.shape_cast %24 : vector<1x32x32xf32> to vector<32x32xf32>
    %cst_14 = arith.constant dense<0.000000e+00> : vector<2x32xf32>
    %26 = tpu.matmul %23, %25, %cst_14 {dimension_numbers = #tpu.dot_dimension_numbers<[1], [0], [0], [1], [0, 0, 1, 1], [], []>} : vector<2x32xf32>, vector<32x32xf32>, vector<2x32xf32> -> vector<2x32xf32>
    %c1_15 = arith.constant 1 : index
    %c0_16 = arith.constant 0 : index
    %27 = vector.load %arg3[%c1_15, %c0_16] : memref<4x32xf32, #tpu.memory_space<vmem>>, vector<1x32xf32>
    %28 = vector.broadcast %27 : vector<1x32xf32> to vector<2x32xf32>
    %29 = arith.addf %26, %28 : vector<2x32xf32>
    %cst_17 = arith.constant 0.000000e+00 : f32
    %30 = vector.broadcast %cst_17 : f32 to vector<2x32xf32>
    %31 = arith.cmpf oge, %29, %30 : vector<2x32xf32>
    %cst_18 = arith.constant 2.000000e-01 : f32
    %32 = vector.broadcast %cst_18 : f32 to vector<2x32xf32>
    %33 = arith.mulf %32, %29 : vector<2x32xf32>
    %34 = arith.select %31, %29, %33 : vector<2x32xi1>, vector<2x32xf32>
    %cst_19 = arith.constant 1.41421354 : f32
    %35 = vector.broadcast %cst_19 : f32 to vector<2x32xf32>
    %36 = arith.mulf %34, %35 : vector<2x32xf32>
    %c2 = arith.constant 2 : index
    %c0_20 = arith.constant 0 : index
    %c0_21 = arith.constant 0 : index
    %37 = vector.load %arg2[%c2, %c0_20, %c0_21] : memref<4x32x32xf32, #tpu.memory_space<vmem>>, vector<1x32x32xf32>
    %38 = vector.shape_cast %37 : vector<1x32x32xf32> to vector<32x32xf32>
    %cst_22 = arith.constant dense<0.000000e+00> : vector<2x32xf32>
    %39 = tpu.matmul %36, %38, %cst_22 {dimension_numbers = #tpu.dot_dimension_numbers<[1], [0], [0], [1], [0, 0, 1, 1], [], []>} : vector<2x32xf32>, vector<32x32xf32>, vector<2x32xf32> -> vector<2x32xf32>
    %c2_23 = arith.constant 2 : index
    %c0_24 = arith.constant 0 : index
    %40 = vector.load %arg3[%c2_23, %c0_24] : memref<4x32xf32, #tpu.memory_space<vmem>>, vector<1x32xf32>
    %41 = vector.broadcast %40 : vector<1x32xf32> to vector<2x32xf32>
    %42 = arith.addf %39, %41 : vector<2x32xf32>
    %cst_25 = arith.constant 0.000000e+00 : f32
    %43 = vector.broadcast %cst_25 : f32 to vector<2x32xf32>
    %44 = arith.cmpf oge, %42, %43 : vector<2x32xf32>
    %cst_26 = arith.constant 2.000000e-01 : f32
    %45 = vector.broadcast %cst_26 : f32 to vector<2x32xf32>
    %46 = arith.mulf %45, %42 : vector<2x32xf32>
    %47 = arith.select %44, %42, %46 : vector<2x32xi1>, vector<2x32xf32>
    %cst_27 = arith.constant 1.41421354 : f32
    %48 = vector.broadcast %cst_27 : f32 to vector<2x32xf32>
    %49 = arith.mulf %47, %48 : vector<2x32xf32>
    %c3 = arith.constant 3 : index
    %c0_28 = arith.constant 0 : index
    %c0_29 = arith.constant 0 : index
    %50 = vector.load %arg2[%c3, %c0_28, %c0_29] : memref<4x32x32xf32, #tpu.memory_space<vmem>>, vector<1x32x32xf32>
    %51 = vector.shape_cast %50 : vector<1x32x32xf32> to vector<32x32xf32>
    %cst_30 = arith.constant dense<0.000000e+00> : vector<2x32xf32>
    %52 = tpu.matmul %49, %51, %cst_30 {dimension_numbers = #tpu.dot_dimension_numbers<[1], [0], [0], [1], [0, 0, 1, 1], [], []>} : vector<2x32xf32>, vector<32x32xf32>, vector<2x32xf32> -> vector<2x32xf32>
    %c3_31 = arith.constant 3 : index
    %c0_32 = arith.constant 0 : index
    %53 = vector.load %arg3[%c3_31, %c0_32] : memref<4x32xf32, #tpu.memory_space<vmem>>, vector<1x32xf32>
    %54 = vector.broadcast %53 : vector<1x32xf32> to vector<2x32xf32>
    %55 = arith.addf %52, %54 : vector<2x32xf32>
    %cst_33 = arith.constant 0.000000e+00 : f32
    %56 = vector.broadcast %cst_33 : f32 to vector<2x32xf32>
    %57 = arith.cmpf oge, %55, %56 : vector<2x32xf32>
    %cst_34 = arith.constant 2.000000e-01 : f32
    %58 = vector.broadcast %cst_34 : f32 to vector<2x32xf32>
    %59 = arith.mulf %58, %55 : vector<2x32xf32>
    %60 = arith.select %57, %55, %59 : vector<2x32xi1>, vector<2x32xf32>
    %cst_35 = arith.constant 1.41421354 : f32
    %61 = vector.broadcast %cst_35 : f32 to vector<2x32xf32>
    %62 = arith.mulf %60, %61 : vector<2x32xf32>
    %c0_36 = arith.constant 0 : index
    %c0_37 = arith.constant 0 : index
    %63 = vector.load %arg4[%c0_36, %c0_37] : memref<2x32xf32, #tpu.memory_space<vmem>>, vector<2x32xf32>
    tpu.vector_store %arg4[%c0_36, %c0_37], %62 {strides = array<i32>} : memref<2x32xf32, #tpu.memory_space<vmem>>, vector<2x32xf32>,
    return
  }
  func.func @transform_0(%arg0: i32) -> (i32, i32) {
    %c0_i32 = arith.constant 0 : i32
    %c0_i32_0 = arith.constant 0 : i32
    %c0_i32_1 = arith.constant 0 : i32
    return %c0_i32, %c0_i32_0 : i32, i32
  }
  func.func @transform_1(%arg0: i32) -> (i32, i32, i32) {
    %c0_i32 = arith.constant 0 : i32
    %c0_i32_0 = arith.constant 0 : i32
    %c0_i32_1 = arith.constant 0 : i32
    %c0_i32_2 = arith.constant 0 : i32
    return %c0_i32, %c0_i32_0, %c0_i32_1 : i32, i32, i32
  }
  func.func @transform_2(%arg0: i32) -> (i32, i32) {
    %c0_i32 = arith.constant 0 : i32
    %c0_i32_0 = arith.constant 0 : i32
    %c0_i32_1 = arith.constant 0 : i32
    return %c0_i32, %c0_i32_0 : i32, i32
  }
  func.func @transform_3(%arg0: i32) -> (i32, i32) {
    %c0_i32 = arith.constant 0 : i32
    %c0_i32_0 = arith.constant 0 : i32
    %c0_i32_1 = arith.constant 0 : i32
    return %c0_i32, %c0_i32_0 : i32, i32
  }
}

</mosaic_0001>

<bundles_post_ra>
// kernel: tpu_custom_call.1
= control target key start
LH: loop header
LB: loop body
LE: loop exit
PB: predicated region body
PF: predicated region fallthrough
CT: control target
= control target key end

     0   :  { %8 = vsyncpa [#allocation3], 0  ;;  %s696_s0 = inlined_call_operand.hbm [shape: f32[2,32], index: 0, kind: input, shape index: {}]   ;;  %s697_s1 = inlined_call_operand.hbm [shape: f32[4,32,32], index: 1, kind: input, shape index: {}]   ;;  %s698_s2 = inlined_call_operand.vmem [shape: f32[4,32], index: 2, kind: input, shape index: {}]   ;;  %s699_s3 = inlined_call_operand.hbm [shape: f32[2,32], index: 3, kind: output, shape index: {}]  }
   0x1   :  { %9 = vsyncpa [#allocation6], 0 }
   0x2   :  { %10 = vsyncpa [#allocation4], 0  ;;  %s595_s12 = smov [#allocation2]   ;;  %s596_s14 = smov [#allocation5]  }
   0x3   :  { %s17_s13 = sshll.u32 %s595_s12, 4  ;;  %s26_s15 = sshll.u32 %s596_s14, 4  ;;  %s18_s13 = int_to_ptr.vmem [resolvable:$true] %s17_s13  ;;  %s623_s15 = int_to_ptr.vmem [resolvable:$true] %s26_s15 }
   0x4   :  { %s523_s18 = scalar_lea.hbm %s696_s0, 32 }
   0x5   :  { %p524_p0 = scmp.ne.s32.totalorder %s696_s0, %s523_s18  ;;  %p527_p1 = scmp.lt.u32.totalorder %s523_s18, %s696_s0 }
   0x7   :  { %p529_p2 = pnand %p527_p1, %p524_p0 }
   0x9   :  { %532 = shalt.err (!%p529_p2)
}
   0xa   :  { %s533_s23 = scalar_lea.vmem %s18_s13, 32  ;;  %p538_p4 = scmp.lt.s32.totalorder %s18_s13, %s18_s13 }
   0xb   :  { %p534_p3 = scmp.ne.s32.totalorder %s18_s13, %s533_s23  ;;  %p539_p5 = scmp.lt.s32.totalorder %s533_s23, %s533_s23 }
   0xd   :  { %p540_p6 = por %p539_p5, %p538_p4 }
   0xf   :  { %p541_p7 = pnand %p540_p6, %p534_p3 }
  0x11   :  { %544 = shalt.err (!%p541_p7)
}
  0x12   :  { %20 = dma.hbm_to_vmem [thread:$0]  %s696_s0, 32, %s18_s13, [#allocation3]  }
  0x13   :  { %s545_s28 = scalar_lea.hbm %s697_s1, 2048 }
  0x14   :  { %p546_p8 = scmp.ne.s32.totalorder %s697_s1, %s545_s28  ;;  %p549_p9 = scmp.lt.u32.totalorder %s545_s28, %s697_s1 }
  0x16   :  { %p551_p10 = pnand %p549_p9, %p546_p8 }
  0x18   :  { %554 = shalt.err (!%p551_p10)
}
  0x19   :  { %s555_s6 = scalar_lea.vmem %s623_s15, 2048  ;;  %p560_p12 = scmp.lt.s32.totalorder %s623_s15, %s623_s15 }
  0x1a   :  { %p556_p11 = scmp.ne.s32.totalorder %s623_s15, %s555_s6  ;;  %p561_p13 = scmp.lt.s32.totalorder %s555_s6, %s555_s6 }
  0x1c   :  { %p562_p0 = por %p561_p13, %p560_p12 }
  0x1e   :  { %p563_p1 = pnand %p562_p0, %p556_p11 }
  0x20   :  { %566 = shalt.err (!%p563_p1)
}
  0x21   :  { %s597_s0 = smov 128   ;;  %s598_s7 = smov 8  }
  0x22   :  { %32 = dma.hbm_to_vmem [thread:$0]  %s697_s1, 2048, %s623_s15, [#allocation6], %s597_s0, %s597_s0, %s598_s7  }
  0x23   :  { %589 = dma.done.wait [#allocation3], 32  }
  0x24   :  { %590 = vsyncadd [#allocation3], 4294967264 }
  0x25   :  { %591 = dma.done.wait [#allocation6], 2048  }
  0x26   :  { %592 = vsyncadd [#allocation6], 4294965248  ;;  %v41_v0 = vld [vmem:[#allocation2] sm:$0x3]  ;;  %vm43_vm0 = vcmask 254976   ;;  %v52_v3 = vld [vmem:[#allocation5] sm:$0xff] }
  0x27   :  { %v42_v1 = vmul.f32 %v41_v0, %v41_v0  ;;  %v53_v4 = vld [vmem:[#allocation5 + $0x8] sm:$0xff]  ;;  %v54_v5 = vld [vmem:[#allocation5 + $0x10] sm:$0xff]  ;;  %v599_v6 = vmov 0.0|0.0   ;;  %v55_v8 = vld [vmem:[#allocation5 + $0x18] sm:$0xff]  ;;  %vm600_vm1 = vmmov 0   ;;  %v601_v9 = vmov 0.0  }
  0x28   :  { %489 = vmatprep.subr.bf16.mxu0 %v599_v6  ;;  %v490_v7 = vpack.c.bf16 %v53_v4, %v52_v3  ;;  %453 = vmatprep.mubr.msk.f32.mxu0 %vm600_vm1, %v601_v9  ;;  %v493_v10 = vpack.c.bf16 %v55_v8, %v54_v5  ;;  %vm61_vm2 = vcmask 261120   ;;  %v140_v16 = vld [vmem:[#allocation5 + $0x20] sm:$0xff]  ;;  %v141_v17 = vld [vmem:[#allocation5 + $0x28] sm:$0xff]  ;;  %v142_v19 = vld [vmem:[#allocation5 + $0x30] sm:$0xff]  ;;  %s602_s17 = smov [#allocation7]  }
  0x29   :  { %v44_v2 = vsel %vm43_vm0, %v42_v1, 0.0  ;;  %495 = vmatprep.subr.bf16.mxu1 %v599_v6  ;;  %464 = vmatprep.mubr.msk.f32.mxu1 %vm600_vm1, %v601_v9  ;;  %v496_v18 = vpack.c.bf16 %v141_v17, %v140_v16  ;;  %v143_v20 = vld [vmem:[#allocation5 + $0x38] sm:$0xff]  ;;  %v417_v22 = vld [vmem:[%s698_s2] ss:$0 sm:$0xff]  ;;  %v227_v29 = vld [vmem:[#allocation5 + $0x40] sm:$0xff]  ;;  %s407_s18 = sshll.u32 %s602_s17, 4  ;;  %s408_s18 = int_to_ptr.vmem [resolvable:$true] %s407_s18 }
  0x2a   :  { %45 = vadd.xlane.f32.xlu0 %v44_v2  ;;  %491 = vmatpush3.bf16.msra.mxu0 %v490_v7  ;;  %v499_v21 = vpack.c.bf16 %v143_v20, %v142_v19  ;;  %v228_v30 = vld [vmem:[#allocation5 + $0x48] sm:$0xff]  ;;  %v229_v32 = vld [vmem:[#allocation5 + $0x50] sm:$0xff]  ;;  %v230_v33 = vld [vmem:[#allocation5 + $0x58] sm:$0xff]  ;;  %s567_s19 = scalar_lea.vmem %s408_s18, 32  ;;  %p572_p3 = scmp.lt.s32.totalorder %s408_s18, %s408_s18 }
  0x2b   :  { %492 = vmatprep.subr.bf16.mxu0 %v599_v6  ;;  %497 = vmatpush3.bf16.msra.mxu1 %v496_v18  ;;  %v502_v31 = vpack.c.bf16 %v228_v30, %v227_v29  ;;  %v505_v34 = vpack.c.bf16 %v230_v33, %v229_v32  ;;  %v419_v35 = vld [vmem:[%s698_s2 + $0x1] ss:$0 sm:$0xff]  ;;  %v314_v42 = vld [vmem:[#allocation5 + $0x60] sm:$0xff]  ;;  %v315_v43 = vld [vmem:[#allocation5 + $0x68] sm:$0xff]  ;;  %p568_p2 = scmp.ne.s32.totalorder %s408_s18, %s567_s19  ;;  %p573_p4 = scmp.lt.s32.totalorder %s567_s19, %s567_s19 }
  0x2c   :  { %498 = vmatprep.subr.bf16.mxu1 %v599_v6  ;;  %v508_v44 = vpack.c.bf16 %v315_v43, %v314_v42  ;;  %v316_v45 = vld [vmem:[#allocation5 + $0x70] sm:$0xff]  ;;  %v317_v46 = vld [vmem:[#allocation5 + $0x78] sm:$0xff] }
  0x2d   :  { %v511_v47 = vpack.c.bf16 %v317_v46, %v316_v45  ;;  %v421_v48 = vld [vmem:[%s698_s2 + $0x2] ss:$0 sm:$0xff]  ;;  %v423_v55 = vld [vmem:[%s698_s2 + $0x3] ss:$0 sm:$0xff]  ;;  %p574_p5 = por %p573_p4, %p572_p3 }
  0x2e   :  { %494 = vmatpush3.bf16.msra.mxu0 %v493_v10 }
  0x2f   :  { %501 = vmatprep.subr.bf16.mxu0 %v599_v6  ;;  %500 = vmatpush3.bf16.msra.mxu1 %v499_v21  ;;  %p575_p6 = pnand %p574_p5, %p568_p2 }
  0x30   :  { %507 = vmatprep.subr.bf16.mxu1 %v599_v6 }
  0xb7   :  { %v46_v11 = vpop.xlane.xlu0 %45 }
  0xb8   :  { %v48_v12 = vmul.f32 0.03125, %v46_v11 }
  0xba   :  { %v49_v13 = vadd.f32 1e-08, %v48_v12 }
  0xbc   :  { %521 = vrsqrt.f32 %v49_v13 }
  0xc6   :  { %v522_v14 = vpop.eup %521 }
  0xc7   :  { %v51_v15 = vmul.f32 %v522_v14, %v41_v0 }
  0xc9   :  { %454 = vmatmul.mubr.msk.f32.vlgmr.msra.gmra.mrb[0].mxu0 %vm61_vm2, %v51_v15 }
  0xca   :  { %475 = vmatprep.mubr.msk.f32.mxu0 %vm600_vm1, %v601_v9  ;;  %503 = vmatpush3.bf16.msra.mxu0 %v502_v31 }
  0xcb   :  { %504 = vmatprep.subr.bf16.mxu0 %v599_v6 }
  0xce   :  { %506 = vmatpush3.bf16.msra.mxu0 %v505_v34 }
 0x19c   :  { %v131_v23 = vpop.f32.mrb[0].mxu0 }
 0x19d   :  { %v132_v24 = vadd.f32 %v417_v22, %v131_v23  ;;  %v455_v25 = vpop.f32.mrb[1].mxu0 }
 0x19f   :  { %vm135_vm3 = vcmp.ge.f32.partialorder %v132_v24, 0.0  ;;  %v136_v26 = vmul.f32 0.2, %v132_v24 }
 0x1a1   :  { %v137_v27 = vsel %vm135_vm3, %v132_v24, %v136_v26 }
 0x1a2   :  { %v138_v28 = vmul.f32 1.4142135, %v137_v27 }
 0x1a4   :  { %465 = vmatmul.mubr.msk.f32.vlgmr.msra.gmra.mrb[0].mxu1 %vm61_vm2, %v138_v28 }
 0x1a5   :  { %486 = vmatprep.mubr.msk.f32.mxu1 %vm600_vm1, %v601_v9  ;;  %509 = vmatpush3.bf16.msra.mxu1 %v508_v44 }
 0x1a6   :  { %510 = vmatprep.subr.bf16.mxu1 %v599_v6 }
 0x1a9   :  { %512 = vmatpush3.bf16.msra.mxu1 %v511_v47 }
 0x277   :  { %v218_v36 = vpop.f32.mrb[0].mxu1 }
 0x278   :  { %v219_v37 = vadd.f32 %v419_v35, %v218_v36  ;;  %v466_v38 = vpop.f32.mrb[1].mxu1 }
 0x27a   :  { %vm222_vm4 = vcmp.ge.f32.partialorder %v219_v37, 0.0  ;;  %v223_v39 = vmul.f32 0.2, %v219_v37 }
 0x27c   :  { %v224_v40 = vsel %vm222_vm4, %v219_v37, %v223_v39 }
 0x27d   :  { %v225_v41 = vmul.f32 1.4142135, %v224_v40 }
 0x27f   :  { %476 = vmatmul.mubr.msk.f32.vlgmr.msra.gmra.mrb[2].mxu0 %vm61_vm2, %v225_v41 }
 0x352   :  { %v305_v49 = vpop.f32.mrb[2].mxu0 }
 0x353   :  { %v306_v50 = vadd.f32 %v421_v48, %v305_v49  ;;  %v477_v51 = vpop.f32.mrb[3].mxu0 }
 0x355   :  { %vm309_vm5 = vcmp.ge.f32.partialorder %v306_v50, 0.0  ;;  %v310_v52 = vmul.f32 0.2, %v306_v50 }
 0x357   :  { %v311_v53 = vsel %vm309_vm5, %v306_v50, %v310_v52 }
 0x358   :  { %v312_v54 = vmul.f32 1.4142135, %v311_v53 }
 0x35a   :  { %487 = vmatmul.mubr.msk.f32.vlgmr.msra.gmra.mrb[2].mxu1 %vm61_vm2, %v312_v54 }
 0x42d   :  { %v392_v56 = vpop.f32.mrb[2].mxu1 }
 0x42e   :  { %v393_v57 = vadd.f32 %v423_v55, %v392_v56  ;;  %v488_v58 = vpop.f32.mrb[3].mxu1 }
 0x430   :  { %vm396_vm6 = vcmp.ge.f32.partialorder %v393_v57, 0.0  ;;  %v397_v59 = vmul.f32 0.2, %v393_v57 }
 0x432   :  { %v398_v60 = vsel %vm396_vm6, %v393_v57, %v397_v59 }
 0x433   :  { %v399_v61 = vmul.f32 1.4142135, %v398_v60 }
 0x435   :  { %400 = vst.msk [vmem:[#allocation7] sm:$0x3] %vm43_vm0, %v399_v61 }
 0x436   :  { %578 = shalt.err (!%p575_p6)
}
 0x437   :  { %s579_s21 = scalar_lea.hbm %s699_s3, 32 }
 0x438   :  { %p580_p7 = scmp.ne.s32.totalorder %s699_s3, %s579_s21  ;;  %p583_p8 = scmp.lt.u32.totalorder %s579_s21, %s699_s3 }
 0x43a   :  { %p585_p9 = pnand %p583_p8, %p580_p7 }
 0x43c   :  { %588 = shalt.err (!%p585_p9)
}
 0x43d   :  { %410 = dma.vmem_to_hbm [thread:$0]  %s408_s18, 32, %s699_s3, [#allocation4]  }
 0x43e   :  { %593 = dma.done.wait [#allocation4], 32  }
 0x43f   :  { %594 = vsyncadd [#allocation4], 4294967264 }
 0x440   :  { %414 = vsyncpa [#allocation3], 1 }
 0x441   :  { %415 = vsyncpa [#allocation6], 1 }
 0x442   :  { %416 = vsyncpa [#allocation4], 1 }

</bundles_post_ra>
